<compile_context>
chip_gen: v7x
topology: tpu7x:2x2x1
jax: 0.10.0
libtpu: 0.0.40
codegen_flags: <defaults>
</compile_context>

<pallas_src>
import jax
import jax.numpy as jnp
from jax.experimental import pallas as pl
from jax.experimental.pallas import tpu as pltpu


def head_projection_kernel(feat_ref, w1_ref, b1_ref, w2_ref, b2_ref, x_ref):
    """One batch tile: Linear -> ReLU -> Linear -> L2 normalize (dim=1)."""
    # Stream feat from HBM in its original f32 layout; cast to the MXU operand dtype
    # in-register (free VPU cast) instead of paying an extra HBM copy in the wrapper.
    feat = feat_ref[...].astype(w1_ref.dtype)

    # hd1 + ReLU (f32 accumulation regardless of operand dtype).
    h = jnp.dot(feat, w1_ref[...], preferred_element_type=jnp.float32) + b1_ref[...]
    h = jnp.maximum(h, 0.0)

    # hd2 (cast the f32 activations back to the weight dtype so bf16 MXU operands stay bf16).
    p = jnp.dot(h.astype(w2_ref.dtype), w2_ref[...],
                preferred_element_type=jnp.float32) + b2_ref[...]

    # F.normalize(p=2, dim=1): x / max(||x||, eps)  ==  x * rsqrt(max(sum(x^2), eps^2))
    eps = jnp.float32(1e-12)
    sumsq = jnp.sum(p * p, axis=1, keepdims=True)        # XLU cross-lane reduce
    inv = jax.lax.rsqrt(jnp.maximum(sumsq, eps * eps))   # EUP rsqrt (free slot)
    x_ref[...] = (p * inv).astype(x_ref.dtype)


def _auto_tile(batch):
    """Pick a batch tile: >= 8 grid steps when possible, tile in [128, 1024] rows."""
    t = pl.next_power_of_2(max(1, batch // 8))
    return int(max(128, min(1024, t)))


def head_projection_forward(feat, w1, b1, w2, b2, *, tb=None, use_bf16=True,
                            out_dtype=jnp.float32):
    """Run the Pallas kernel over a batch-tiled grid.

    feat: [B, D_in] float32 (streamed as-is; cast to bf16 inside the kernel if use_bf16)
    w1:   [D_in, D_in]   (pre-transposed)   b1: [D_in]
    w2:   [D_in, D_out]  (pre-transposed)   b2: [D_out]
    Returns [B, D_out] out_dtype (L2-normalized per row).
    """
    B, d_in = feat.shape
    d_out = w2.shape[1]
    if tb is None:
        tb = _auto_tile(B)
    grid = pl.cdiv(B, tb)  # partial last tile handled by Pallas boundary masking (no jnp.pad)

    op_dtype = jnp.bfloat16 if use_bf16 else jnp.float32
    # Only the tiny, grid-resident weights are pre-cast; feat stays f32 in HBM.
    w1_c = w1.astype(op_dtype)
    w2_c = w2.astype(op_dtype)
    b1_c = b1.reshape(1, d_in).astype(jnp.float32)
    b2_c = b2.reshape(1, d_out).astype(jnp.float32)

    in_itemsize = jnp.dtype(feat.dtype).itemsize
    out_itemsize = jnp.dtype(out_dtype).itemsize
    w_itemsize = jnp.dtype(op_dtype).itemsize

    # Advisory cost estimate: two matmuls + small epilogue; one rsqrt per row.
    cost = pl.CostEstimate(
        flops=2 * B * d_in * d_in + 2 * B * d_in * d_out + 4 * B * d_out,
        transcendentals=B,
        bytes_accessed=(B * d_in * in_itemsize + B * d_out * out_itemsize
                        + (d_in * d_in + d_in * d_out) * w_itemsize
                        + (d_in + d_out) * 4),
    )

    # Rough per-step VMEM footprint (double-buffered feat/out tiles + temporaries + weights).
    vmem_est = (2 * tb * d_in * in_itemsize          # feat double buffer
                + 2 * tb * d_out * out_itemsize      # out double buffer
                + tb * d_in * w_itemsize             # in-kernel bf16 cast of feat
                + tb * d_in * 4 + tb * d_out * 4     # h, p f32 temporaries
                + (d_in * d_in + d_in * d_out) * w_itemsize
                + (d_in + d_out) * 4)
    cp_kwargs = dict(dimension_semantics=("parallel",))  # batch tiles independent -> megacore
    if vmem_est > 12 * 1024 * 1024:
        # Raise v5e's 16 MiB scoped default for big tiles; cap below v7x's 64 MiB physical VMEM.
        cp_kwargs["vmem_limit_bytes"] = min(int(vmem_est * 3 // 2), 48 * 1024 * 1024)

    out = pl.pallas_call(
        head_projection_kernel,
        out_shape=jax.ShapeDtypeStruct((B, d_out), out_dtype),
        grid_spec=pltpu.PrefetchScalarGridSpec(
            num_scalar_prefetch=0,
            grid=(grid,),
            in_specs=[
                pl.BlockSpec((tb, d_in),    lambda i: (i, 0)),   # feat: tiled over batch
                pl.BlockSpec((d_in, d_in),  lambda i: (0, 0)),   # w1:   resident
                pl.BlockSpec((1, d_in),     lambda i: (0, 0)),   # b1:   resident
                pl.BlockSpec((d_in, d_out), lambda i: (0, 0)),   # w2:   resident
                pl.BlockSpec((1, d_out),    lambda i: (0, 0)),   # b2:   resident
            ],
            out_specs=pl.BlockSpec((tb, d_out), lambda i: (i, 0)),
        ),
        compiler_params=pltpu.CompilerParams(**cp_kwargs),
        cost_estimate=cost,
    )(feat, w1_c, b1_c, w2_c, b2_c)

    return out


def init_params(key, d_in, d_out):
    """Deterministic xavier-ish init; weights pre-transposed to [in, out]."""
    def xavier(k, fan_in, fan_out):
        lim = jnp.sqrt(6.0 / (fan_in + fan_out)).astype(jnp.float32)
        return jax.random.uniform(k, (fan_in, fan_out), jnp.float32, -lim, lim)

    k1, k2, k3, k4 = jax.random.split(key, 4)
    return {
        "w1": xavier(k1, d_in, d_in),
        "b1": jax.random.uniform(k2, (d_in,), jnp.float32, -0.1, 0.1),
        "w2": xavier(k3, d_in, d_out),
        "b2": jax.random.uniform(k4, (d_out,), jnp.float32, -0.1, 0.1),
    }


def reference_forward(feat, p):
    """Plain-JAX f32 reference mirroring the PyTorch forward."""
    h = jnp.maximum(feat @ p["w1"] + p["b1"], 0.0)
    x = h @ p["w2"] + p["b2"]
    return x / jnp.maximum(jnp.linalg.norm(x, axis=1, keepdims=True), 1e-12)


if __name__ == "__main__":
    # Lane-dense feature sizes (multiples of 128) and a small multi-tile batch.
    B, D_IN, D_OUT = 384, 128, 128

    key = jax.random.PRNGKey(0)
    k_feat, k_params = jax.random.split(key)
    feat = jax.random.normal(k_feat, (B, D_IN), jnp.float32)
    params = init_params(k_params, D_IN, D_OUT)

    x_expect = reference_forward(feat, params)

    # Default path: bf16 MXU operands cast in-kernel, f32 accumulation/epilogue, auto tile.
    x_bf16 = jax.block_until_ready(
        head_projection_forward(feat, params["w1"], params["b1"],
                                params["w2"], params["b2"]))
    assert x_bf16.shape == (B, D_OUT)
    assert jnp.allclose(x_bf16, x_expect, atol=5e-2, rtol=5e-2)

    # f32 MXU path with a tile that does NOT divide B (tb=256, B=384): exercises the
    # pad-free boundary-masked last block; bit-faithful to the PyTorch f32 forward.
    x_f32 = jax.block_until_ready(
        head_projection_forward(feat, params["w1"], params["b1"],
                                params["w2"], params["b2"], tb=256, use_bf16=False))
    assert jnp.allclose(x_f32, x_expect, atol=1e-5, rtol=1e-5)

    print("KERNEL_OK")
</pallas_src>

<mosaic_0001>
module attributes {stable_mosaic.version = 11 : i64} {
  func.func @head_projection_kernel(%arg0: i32, %arg1: memref<128x128xf32, #tpu.memory_space<vmem>>, %arg2: memref<128x128xbf16, #tpu.memory_space<vmem>>, %arg3: memref<1x128xf32, #tpu.memory_space<vmem>>, %arg4: memref<128x128xbf16, #tpu.memory_space<vmem>>, %arg5: memref<1x128xf32, #tpu.memory_space<vmem>>, %arg6: memref<128x128xf32, #tpu.memory_space<vmem>>) attributes {dimension_semantics = [#tpu.dimension_semantics<parallel>], iteration_bounds = array<i64: 3>, scalar_prefetch = 0 : i64, scratch_operands = 0 : i64, tpu.core_type = #tpu.core_type<tc>, window_params = [{transform_indices = @transform_0, window_bounds = array<i64: 128, 128>}, {pipeline_mode = #tpu.pipeline_mode<synchronous>, transform_indices = @transform_1, window_bounds = array<i64: 128, 128>}, {pipeline_mode = #tpu.pipeline_mode<synchronous>, transform_indices = @transform_2, window_bounds = array<i64: 1, 128>}, {pipeline_mode = #tpu.pipeline_mode<synchronous>, transform_indices = @transform_3, window_bounds = array<i64: 128, 128>}, {pipeline_mode = #tpu.pipeline_mode<synchronous>, transform_indices = @transform_4, window_bounds = array<i64: 1, 128>}, {transform_indices = @transform_5, window_bounds = array<i64: 128, 128>}]} {
    %c0 = arith.constant 0 : index
    %c0_0 = arith.constant 0 : index
    %0 = vector.load %arg1[%c0, %c0_0] : memref<128x128xf32, #tpu.memory_space<vmem>>, vector<128x128xf32>
    %1 = arith.truncf %0 : vector<128x128xf32> to vector<128x128xbf16>
    %c0_1 = arith.constant 0 : index
    %c0_2 = arith.constant 0 : index
    %2 = vector.load %arg2[%c0_1, %c0_2] : memref<128x128xbf16, #tpu.memory_space<vmem>>, vector<128x128xbf16>
    %cst = arith.constant dense<0.000000e+00> : vector<128x128xf32>
    %3 = tpu.matmul %1, %2, %cst {dimension_numbers = #tpu.dot_dimension_numbers<[1], [0], [0], [1], [0, 0, 1, 1], [], []>} : vector<128x128xbf16>, vector<128x128xbf16>, vector<128x128xf32> -> vector<128x128xf32>
    %c0_3 = arith.constant 0 : index
    %c0_4 = arith.constant 0 : index
    %4 = vector.load %arg3[%c0_3, %c0_4] : memref<1x128xf32, #tpu.memory_space<vmem>>, vector<1x128xf32>
    %5 = vector.broadcast %4 : vector<1x128xf32> to vector<128x128xf32>
    %6 = arith.addf %3, %5 : vector<128x128xf32>
    %cst_5 = arith.constant 0.000000e+00 : f32
    %7 = vector.broadcast %cst_5 : f32 to vector<128x128xf32>
    %8 = arith.maximumf %6, %7 : vector<128x128xf32>
    %9 = arith.truncf %8 : vector<128x128xf32> to vector<128x128xbf16>
    %c0_6 = arith.constant 0 : index
    %c0_7 = arith.constant 0 : index
    %10 = vector.load %arg4[%c0_6, %c0_7] : memref<128x128xbf16, #tpu.memory_space<vmem>>, vector<128x128xbf16>
    %cst_8 = arith.constant dense<0.000000e+00> : vector<128x128xf32>
    %11 = tpu.matmul %9, %10, %cst_8 {dimension_numbers = #tpu.dot_dimension_numbers<[1], [0], [0], [1], [0, 0, 1, 1], [], []>} : vector<128x128xbf16>, vector<128x128xbf16>, vector<128x128xf32> -> vector<128x128xf32>
    %c0_9 = arith.constant 0 : index
    %c0_10 = arith.constant 0 : index
    %12 = vector.load %arg5[%c0_9, %c0_10] : memref<1x128xf32, #tpu.memory_space<vmem>>, vector<1x128xf32>
    %13 = vector.broadcast %12 : vector<1x128xf32> to vector<128x128xf32>
    %14 = arith.addf %11, %13 : vector<128x128xf32>
    %15 = arith.mulf %14, %14 : vector<128x128xf32>
    %cst_11 = arith.constant dense<0.000000e+00> : vector<128xf32>
    %16 = vector.multi_reduction <add>, %15, %cst_11 [1] : vector<128x128xf32> to vector<128xf32>
    %17 = vector.shape_cast %16 : vector<128xf32> to vector<128x1xf32>
    %cst_12 = arith.constant 9.99999996E-13 : f32
    %cst_13 = arith.constant 9.99999996E-13 : f32
    %18 = arith.mulf %cst_12, %cst_13 : f32
    %19 = vector.broadcast %18 : f32 to vector<128x1xf32>
    %20 = arith.maximumf %17, %19 : vector<128x1xf32>
    %21 = math.rsqrt %20 : vector<128x1xf32>
    %22 = vector.broadcast %21 : vector<128x1xf32> to vector<128x128xf32>
    %23 = arith.mulf %14, %22 : vector<128x128xf32>
    %c0_14 = arith.constant 0 : index
    %c0_15 = arith.constant 0 : index
    %24 = vector.load %arg6[%c0_14, %c0_15] : memref<128x128xf32, #tpu.memory_space<vmem>>, vector<128x128xf32>
    tpu.vector_store %arg6[%c0_14, %c0_15], %23 {strides = array<i32>} : memref<128x128xf32, #tpu.memory_space<vmem>>, vector<128x128xf32>,
    return
  }
  func.func @transform_0(%arg0: i32) -> (i32, i32) {
    %c0_i32 = arith.constant 0 : i32
    %c0_i32_0 = arith.constant 0 : i32
    return %arg0, %c0_i32 : i32, i32
  }
  func.func @transform_1(%arg0: i32) -> (i32, i32) {
    %c0_i32 = arith.constant 0 : i32
    %c0_i32_0 = arith.constant 0 : i32
    %c0_i32_1 = arith.constant 0 : i32
    return %c0_i32, %c0_i32_0 : i32, i32
  }
  func.func @transform_2(%arg0: i32) -> (i32, i32) {
    %c0_i32 = arith.constant 0 : i32
    %c0_i32_0 = arith.constant 0 : i32
    %c0_i32_1 = arith.constant 0 : i32
    return %c0_i32, %c0_i32_0 : i32, i32
  }
  func.func @transform_3(%arg0: i32) -> (i32, i32) {
    %c0_i32 = arith.constant 0 : i32
    %c0_i32_0 = arith.constant 0 : i32
    %c0_i32_1 = arith.constant 0 : i32
    return %c0_i32, %c0_i32_0 : i32, i32
  }
  func.func @transform_4(%arg0: i32) -> (i32, i32) {
    %c0_i32 = arith.constant 0 : i32
    %c0_i32_0 = arith.constant 0 : i32
    %c0_i32_1 = arith.constant 0 : i32
    return %c0_i32, %c0_i32_0 : i32, i32
  }
  func.func @transform_5(%arg0: i32) -> (i32, i32) {
    %c0_i32 = arith.constant 0 : i32
    %c0_i32_0 = arith.constant 0 : i32
    return %arg0, %c0_i32 : i32, i32
  }
}

</mosaic_0001>

<bundles_post_ra>
// kernel: tpu_custom_call.1
= control target key start
LH: loop header
LB: loop body
LE: loop exit
PB: predicated region body
PF: predicated region fallthrough
CT: control target
= control target key end

     0   :  { %10 = vsyncpa [#allocation3], 0  ;;  %s1682_s0 = inlined_call_operand.hbm [shape: f32[384,128], index: 0, kind: input, shape index: {}]   ;;  %s1683_s1 = inlined_call_operand.hbm [shape: bf16[128,128], index: 1, kind: input, shape index: {}]   ;;  %s1684_s2 = inlined_call_operand.vmem [shape: f32[1,128], index: 2, kind: input, shape index: {}]   ;;  %s1685_s3 = inlined_call_operand.hbm [shape: bf16[128,128], index: 3, kind: input, shape index: {}]   ;;  %s1686_s4 = inlined_call_operand.vmem [shape: f32[1,128], index: 4, kind: input, shape index: {}]   ;;  %s1687_s5 = inlined_call_operand.hbm [shape: f32[384,128], index: 5, kind: output, shape index: {}]  }
   0x1   :  { %12 = vsyncpa [#allocation3 + $0x1], 0 }
   0x2   :  { %13 = vsyncpa [#allocation6], 0 }
   0x3   :  { %14 = vsyncpa [#allocation4], 0 }
   0x4   :  { %16 = vsyncpa [#allocation4 + $0x1], 0  ;;  %s1330_s18 = smov 0   ;;  %s1332_s19 = smov 0  }
   0x5   :  { %s1334_s20 = smov 0   ;;  %s1336_s21 = smov 0  }
   0x6 LB: > { %s1351_s22 = sadd.s32 4294967295, %s1288_s21   ;;  %s877_s23 = sadd.s32 4294967294, %s1288_s21   ;;  %s1288_s21 = sphi %s1336_s21, %s1706_s21   ;;  %s1284_s20 = sphi %s1334_s20, %s1705_s20   ;;  %s1280_s19 = sphi %s1332_s19, %s1704_s19   ;;  %s1276_s18 = sphi %s1330_s18, %s1703_s18  }
   0x7   : > { %p42_p0 = scmp.ne.s32.totalorder %s1280_s19, %s1276_s18  ;;  %p1688_p1 = scmp.eq.s32.totalorder %s1351_s22, 0 }
   0x8   : > { %p156_p3 = scmp.eq.s32.totalorder %s877_s23, 2  ;;  %p878_p5 = scmp.ge.s32.totalorder %s1288_s21, 1 }
   0x9   : > { %p1360_p4 = por %p1688_p1, %p42_p0  ;;  %p163_p7 = scmp.lt.s32.totalorder %s1288_s21, 4 }
   0xa   : > { %p1365_p6 = por %p156_p3, %p42_p0  ;;  %s1290_s27 = smov [#allocation5]  }
   0xb   : > { %s1691_s24 = scalar_select %p1360_p4, 1, 0 }
   0xc   : > { %s1692_s25 = scalar_select %p1365_p6, 1, 0 }
   0xd   : > { %p1370_p8 = pnand %p878_p5, %p163_p7  ;;  %s175_s28 = sshll.u32 %s1290_s27, 4  ;;  %s176_s28 = int_to_ptr.vmem [resolvable:$true] %s175_s28 }
   0xe   : > { %s1291_s30 = smov [#allocation7]   ;;  %s1132_s9 = scalar_lea.hbm %s1683_s1, 1024 }
   0xf   : > { %s1693_s26 = scalar_select %p1370_p8, 1, 0 }
  0x10   : > { %p1023_p9 = pneg %p1370_p8  ;;  %s191_s6 = sshll.u32 %s1291_s30, 4  ;;  %s1382_s6 = int_to_ptr.vmem [resolvable:$true] %s191_s6 }
  0x11   : > { %p1133_p11 = scmp.ne.s32.totalorder %s1683_s1, %s1132_s9  ;;  %p1139_p3 = scmp.lt.u32.totalorder %s1132_s9, %s1683_s1 }
  0x12   : > { %p1378_p10 = pnand %p1023_p9, %p1688_p1 }
  0x14   : > { %p1134_p12 = pneg %p1378_p10 }
  0x16   : > { %p1135_p13 = pnand %p1134_p12, %p1133_p11 }
  0x18   : > { %p1136_p0 = pneg %p1135_p13 }
  0x1a   : > { %p1141_p5 = pnand %p1139_p3, %p1136_p0 }
  0x1c   : > { %1144 = shalt.err (!%p1141_p5)
}
  0x1d   : > { %s1145_s14 = scalar_lea.vmem %s176_s28, 1024  ;;  %p1153_p2 = scmp.lt.s32.totalorder %s176_s28, %s176_s28 }
  0x1e   : > { %p1146_p7 = scmp.ne.s32.totalorder %s176_s28, %s1145_s14  ;;  %p1154_p6 = scmp.lt.s32.totalorder %s1145_s14, %s1145_s14 }
  0x20   : > { %p1148_p9 = pnand %p1146_p7, %p1134_p12  ;;  %p1155_p4 = por %p1154_p6, %p1153_p2 }
  0x22   : > { %p1149_p1 = pneg %p1148_p9 }
  0x24   : > { %p1156_p8 = pnand %p1155_p4, %p1149_p1 }
  0x26   : > { %1159 = shalt.err (!%p1156_p8)
}
  0x27   : > { %s1292_s15 = smov 64   ;;  %s1293_s16 = smov 4  }
  0x28   : > { %1026 = dma.hbm_to_vmem [thread:$0]  (!%p1378_p10), %s1683_s1, 1024, %s176_s28, [#allocation6], %s1292_s15, %s1292_s15, %s1293_s16  }
  0x29   : > { %s1160_s7 = scalar_lea.hbm %s1685_s3, 1024 }
  0x2a   : > { %p1161_p11 = scmp.ne.s32.totalorder %s1685_s3, %s1160_s7  ;;  %p1167_p4 = scmp.lt.u32.totalorder %s1160_s7, %s1685_s3 }
  0x2c   : > { %p1163_p1 = pnand %p1161_p11, %p1134_p12 }
  0x2e   : > { %p1164_p2 = pneg %p1163_p1 }
  0x30   : > { %p1169_p6 = pnand %p1167_p4, %p1164_p2 }
  0x32   : > { %1172 = shalt.err (!%p1169_p6)
}
  0x33   : > { %s1173_s28 = scalar_lea.vmem %s1382_s6, 1024  ;;  %p1181_p3 = scmp.lt.s32.totalorder %s1382_s6, %s1382_s6 }
  0x34   : > { %p1174_p8 = scmp.ne.s32.totalorder %s1382_s6, %s1173_s28  ;;  %p1182_p5 = scmp.lt.s32.totalorder %s1173_s28, %s1173_s28 }
  0x36   : > { %p1176_p13 = pnand %p1174_p8, %p1134_p12  ;;  %p1183_p7 = por %p1182_p5, %p1181_p3 }
  0x38   : > { %p1177_p0 = pneg %p1176_p13 }
  0x3a   : > { %p1184_p9 = pnand %p1183_p7, %p1177_p0 }
  0x3c   : > { %1187 = shalt.err (!%p1184_p9)
}
  0x3d   : > { %1029 = dma.hbm_to_vmem [thread:$0]  (!%p1378_p10), %s1685_s3, 1024, %s1382_s6, [#allocation6], %s1292_s15, %s1292_s15, %s1293_s16  }
  0x3e   : > { %s1432_s14 = sadd.s32 1, %s1288_s21   ;;  %s29_s29 = sadd.s32 1, %s1284_s20 }
  0x3f   : > { %s26_s17 = ssub.s32 %s1288_s21, %s1432_s14  ;;  %p36_p12 = scmp.ne.s32.totalorder %s1284_s20, %s1280_s19 }
  0x40   : > { %p27_p11 = scmp.eq.s32.totalorder %s26_s17, 0  ;;  %p37_p1 = scmp.eq.s32.totalorder %s1288_s21, 0 }
  0x41   : > { %p1695_p2 = scmp.eq.s32.totalorder %s1351_s22, 2  ;;  %p1040_p6 = scmp.lt.s32.totalorder %s1288_s21, 3 }
  0x42   : > { %s1448_s27 = scalar_select %p27_p11, %s1284_s20, %s29_s29  }
  0x43   : > { %p1442_p4 = por %p1695_p2, %p36_p12  ;;  %p38_p8 = por %p37_p1, %p36_p12 }
  0x44   : > { %s208_s30 = sand.u32 1, %s1284_s20   ;;  %s913_s6 = sshll.u32 %s1288_s21, 11 }
  0x45   : > { %s882_s7 = sshll.u32 %s208_s30, 7  ;;  %s1455_s8 = scalar_lea.hbm %s1682_s0, %s913_s6 }
  0x46   : > { %s212_s9 = scalar_lea.vmem [#allocation2], %s882_s7  ;;  %p1459_p10 = pnand %p1040_p6, %p38_p8 }
  0x47   : > { %s219_s10 = sshll.u32 %s212_s9, 4  ;;  %s1463_s28 = scalar_lea.sflag [#allocation3], %s208_s30  ;;  %s1457_s10 = int_to_ptr.vmem [resolvable:$true] %s219_s10 }
  0x48   : > { %s1188_s12 = scalar_lea.hbm %s1455_s8, 2048  ;;  %p1190_p0 = pneg %p1459_p10 }
  0x49   : > { %p1189_p13 = scmp.ne.s32.totalorder %s1455_s8, %s1188_s12  ;;  %s1193_s17 = scalar_lea.hbm %s1682_s0, 6144 }
  0x4a   : > { %p1194_p7 = scmp.lt.u32.totalorder %s1455_s8, %s1682_s0  ;;  %p1195_p9 = scmp.lt.u32.totalorder %s1193_s17, %s1188_s12 }
  0x4b   : > { %p1191_p3 = pnand %p1190_p0, %p1189_p13  ;;  %p1197_p11 = scmp.lt.u32.totalorder %s1188_s12, %s1455_s8 }
  0x4c   : > { %p1196_p12 = por %p1195_p9, %p1194_p7 }
  0x4d   : > { %p1192_p5 = pneg %p1191_p3 }
  0x4e   : > { %p1198_p1 = por %p1197_p11, %p1196_p12 }
  0x50   : > { %p1199_p2 = pnand %p1198_p1, %p1192_p5 }
  0x52   : > { %1202 = shalt.err (!%p1199_p2)
}
  0x53   : > { %s1203_s30 = scalar_lea.vmem %s1457_s10, 2048  ;;  %s1294_s15 = smov [#allocation2]  }
  0x54   : > { %p1204_p6 = scmp.ne.s32.totalorder %s1457_s10, %s1203_s30  ;;  %s1208_s16 = sshll.u32 %s1294_s15, 4  ;;  %s1209_s16 = int_to_ptr.vmem [resolvable:$false] %s1208_s16 }
  0x55   : > { %s1210_s9 = scalar_lea.vmem %s1209_s16, 4096  ;;  %p1211_p3 = scmp.lt.s32.totalorder %s1457_s10, %s1209_s16 }
  0x56   : > { %p1206_p8 = pnand %p1204_p6, %p1190_p0  ;;  %p1212_p7 = scmp.lt.s32.totalorder %s1210_s9, %s1203_s30 }
  0x58   : > { %p1207_p13 = pneg %p1206_p8  ;;  %p1213_p9 = por %p1212_p7, %p1211_p3 }
  0x5a   : > { %p1214_p12 = pnand %p1213_p9, %p1207_p13 }
  0x5c   : > { %1217 = shalt.err (!%p1214_p12)
}
  0x5d   : > { %s1295_s12 = smov 128   ;;  %s1296_s13 = smov 8  }
  0x5e   : > { %1033 = dma.hbm_to_vmem [thread:$0]  (!%p1459_p10), %s1455_s8, 2048, %s1457_s10, %s1463_s28, %s1295_s12, %s1295_s12, %s1296_s13  }
  0x5f   : > { %p1698_p0 = scmp.ne.s32.totalorder %s1693_s26, 0 }
  0x60   : > { %s1494_s29 = sand.u32 (!%p1698_p0), 1, %s1280_s19   ;;  %p1699_p5 = scmp.ne.s32.totalorder (!%p1698_p0), %s1691_s24, 0 }
  0x61   : > { %231 = sbr.rel (%p1698_p0) target bundleno = 782 (0x30e), region = 40  ;;  %s886_s17 = sshll.u32 (!%p1698_p0), %s1494_s29, 7 }
  0x62   : > { %s234_s7 = scalar_lea.sflag (!%p1698_p0), [#allocation3], %s1494_s29  ;;  %s1500_s6 = scalar_lea.vmem (!%p1698_p0), [#allocation2], %s886_s17 }
  0x68   : > { %1263 = dma.done.wait (%p1699_p5), %s234_s7, 2048  }
  0x69   : > { %1265 = vsyncadd (%p1699_p5), %s234_s7, 4294965248  ;;  %p1700_p10 = scmp.eq.s32.totalorder %s1351_s22, 0 }
  0x6b   : > { %1267 = dma.done.wait (%p1700_p10), [#allocation6], 2048   ;;  %p1701_p11 = pmov %p1700_p10 }
  0x6c   : > { %v1084_v0 = vld [vmem:[#allocation5] sm:$0xff]   ;;  %v1085_v1 = vld [vmem:[#allocation5 + $0x8] sm:$0xff]   ;;  %v1086_v2 = vld [vmem:[#allocation5 + $0x10] sm:$0xff]   ;;  %s1600_s11 = scalar_lea.vmem [#allocation8], %s886_s17  ;;  %s914_s28 = sshll.u32 %s1351_s22, 11 }
  0x6d   : > { %1269 = vsyncadd (%p1701_p11), [#allocation6], 4294965248  ;;  %947 = vmatprep.subr.bf16.mxu0 %v1084_v0  ;;  %v1087_v3 = vld [vmem:[#allocation5 + $0x18] sm:$0xff]   ;;  %v275_v4 = vld [vmem:[%s1500_s6] sm:$0xff]  ;;  %s785_s30 = sshll.u32 %s1600_s11, 4  ;;  %s1634_s9 = scalar_lea.hbm %s1687_s5, %s914_s28  ;;  %s1636_s30 = int_to_ptr.vmem [resolvable:$true] %s785_s30 }
  0x6e   : > { %948 = vmatpush3.bf16.msra.mxu0 %v1084_v0  ;;  %v276_v5 = vld [vmem:[%s1500_s6 + $0x8] sm:$0xff]  ;;  %v1088_v7 = vld [vmem:[#allocation5 + $0x20] sm:$0xff]   ;;  %v1094_v11 = vld [vmem:[#allocation7 + $0x10] sm:$0xff]   ;;  %s772_s22 = scalar_lea.sflag [#allocation4], %s1494_s29  ;;  %s1218_s12 = scalar_lea.vmem %s1636_s30, 2048 }
  0x6f   : > { %949 = vmatprep.subr.bf16.mxu0 %v1085_v1  ;;  %v291_v6 = vpack.c.bf16 %v276_v5, %v275_v4  ;;  %v1092_v8 = vld [vmem:[#allocation7] sm:$0xff]   ;;  %v1093_v9 = vld [vmem:[#allocation7 + $0x8] sm:$0xff]   ;;  %v1090_v12 = vld [vmem:[#allocation5 + $0x30] sm:$0xff]   ;;  %p1219_p1 = scmp.ne.s32.totalorder %s1636_s30, %s1218_s12  ;;  %s1297_s13 = smov [#allocation8]  }
  0x70   : > { %v1089_v10 = vld [vmem:[#allocation5 + $0x28] sm:$0xff]   ;;  %979 = vmatprep.subr.bf16.mxu1 %v1092_v8  ;;  %v1095_v13 = vld [vmem:[#allocation7 + $0x18] sm:$0xff]   ;;  %v1096_v15 = vld [vmem:[#allocation7 + $0x20] sm:$0xff]   ;;  %s1222_s17 = sshll.u32 %s1297_s13, 4  ;;  %s1223_s17 = int_to_ptr.vmem [resolvable:$false] %s1222_s17 }
  0x71   : > { %963 = vmatprep.mubr.bf16.mxu0 %v291_v6  ;;  %980 = vmatpush3.bf16.msra.mxu1 %v1092_v8  ;;  %v1091_v14 = vld [vmem:[#allocation5 + $0x38] sm:$0xff]   ;;  %v277_v16 = vld [vmem:[%s1500_s6 + $0x10] sm:$0xff]  ;;  %v279_v18 = vld [vmem:[%s1500_s6 + $0x20] sm:$0xff]  ;;  %p1220_p2 = pnand %p1219_p1, %p1442_p4  ;;  %s1224_s7 = scalar_lea.vmem %s1223_s17, 4096 }
  0x72   : > { %950 = vmatpush3.bf16.msra.mxu0 %v1085_v1  ;;  %981 = vmatprep.subr.bf16.mxu1 %v1093_v9  ;;  %v278_v17 = vld [vmem:[%s1500_s6 + $0x18] sm:$0xff]  ;;  %v280_v19 = vld [vmem:[%s1500_s6 + $0x28] sm:$0xff]  ;;  %v281_v23 = vld [vmem:[%s1500_s6 + $0x30] sm:$0xff]  ;;  %p1225_p8 = scmp.lt.s32.totalorder %s1636_s30, %s1223_s17  ;;  %p1226_p13 = scmp.lt.s32.totalorder %s1224_s7, %s1218_s12 }
  0x73   : > { %951 = vmatprep.subr.bf16.mxu0 %v1086_v2  ;;  %v292_v20 = vpack.c.bf16 %v278_v17, %v277_v16  ;;  %v1097_v21 = vld [vmem:[#allocation7 + $0x28] sm:$0xff]   ;;  %v293_v22 = vpack.c.bf16 %v280_v19, %v279_v18  ;;  %v282_v24 = vld [vmem:[%s1500_s6 + $0x38] sm:$0xff]  ;;  %v283_v25 = vld [vmem:[%s1500_s6 + $0x40] sm:$0xff]  ;;  %p1221_p6 = pneg %p1220_p2 }
  0x74   : > { %v284_v26 = vld [vmem:[%s1500_s6 + $0x48] sm:$0xff]  ;;  %v294_v27 = vpack.c.bf16 %v282_v24, %v281_v23  ;;  %v285_v29 = vld [vmem:[%s1500_s6 + $0x50] sm:$0xff]  ;;  %v286_v30 = vld [vmem:[%s1500_s6 + $0x58] sm:$0xff]  ;;  %p1227_p3 = por %p1226_p13, %p1225_p8 }
  0x75   : > { %982 = vmatpush3.bf16.msra.mxu1 %v1093_v9  ;;  %v295_v28 = vpack.c.bf16 %v284_v26, %v283_v25  ;;  %v287_v31 = vld [vmem:[%s1500_s6 + $0x60] sm:$0xff]  ;;  %v288_v32 = vld [vmem:[%s1500_s6 + $0x68] sm:$0xff]  ;;  %v296_v33 = vpack.c.bf16 %v286_v30, %v285_v29  ;;  %v289_v35 = vld [vmem:[%s1500_s6 + $0x70] sm:$0xff] }
  0x76   : > { %952 = vmatpush3.bf16.msra.mxu0 %v1086_v2  ;;  %983 = vmatprep.subr.bf16.mxu1 %v1094_v11  ;;  %v297_v34 = vpack.c.bf16 %v288_v32, %v287_v31  ;;  %v290_v36 = vld [vmem:[%s1500_s6 + $0x78] sm:$0xff]  ;;  %v1098_v38 = vld [vmem:[#allocation7 + $0x30] sm:$0xff]   ;;  %v890_v40 = vld [vmem:[%s1684_s2] ss:$0 sm:$0xff]  ;;  %p1228_p7 = pnand %p1227_p3, %p1221_p6 }
  0x77   : > { %953 = vmatprep.subr.bf16.mxu0 %v1087_v3  ;;  %v298_v37 = vpack.c.bf16 %v290_v36, %v289_v35  ;;  %v1099_v39 = vld [vmem:[#allocation7 + $0x38] sm:$0xff]  }
  0x79   : > { %984 = vmatpush3.bf16.msra.mxu1 %v1094_v11 }
  0x7a   : > { %954 = vmatpush3.bf16.msra.mxu0 %v1087_v3  ;;  %985 = vmatprep.subr.bf16.mxu1 %v1095_v13 }
  0x7b   : > { %955 = vmatprep.subr.bf16.mxu0 %v1088_v7 }
  0x7d   : > { %986 = vmatpush3.bf16.msra.mxu1 %v1095_v13 }
  0x7e   : > { %956 = vmatpush3.bf16.msra.mxu0 %v1088_v7  ;;  %987 = vmatprep.subr.bf16.mxu1 %v1096_v15 }
  0x7f   : > { %957 = vmatprep.subr.bf16.mxu0 %v1089_v10 }
  0x81   : > { %988 = vmatpush3.bf16.msra.mxu1 %v1096_v15 }
  0x82   : > { %958 = vmatpush3.bf16.msra.mxu0 %v1089_v10  ;;  %989 = vmatprep.subr.bf16.mxu1 %v1097_v21 }
  0x83   : > { %959 = vmatprep.subr.bf16.mxu0 %v1090_v12 }
  0x85   : > { %990 = vmatpush3.bf16.msra.mxu1 %v1097_v21 }
  0x86   : > { %960 = vmatpush3.bf16.msra.mxu0 %v1090_v12  ;;  %991 = vmatprep.subr.bf16.mxu1 %v1098_v38 }
  0x87   : > { %961 = vmatprep.subr.bf16.mxu0 %v1091_v14 }
  0x89   : > { %992 = vmatpush3.bf16.msra.mxu1 %v1098_v38 }
  0x8a   : > { %962 = vmatpush3.bf16.msra.mxu0 %v1091_v14  ;;  %993 = vmatprep.subr.bf16.mxu1 %v1099_v39 }
  0x8d   : > { %964 = vmatmul.mubr.bf16.vlgmr.msra.gmra.mrb[0].mxu0 %v292_v20  ;;  %994 = vmatpush3.bf16.msra.mxu1 %v1099_v39 }
  0x8e   : > { %967 = vmatprep.mubr.bf16.mxu0 %v293_v22 }
  0x95   : > { %968 = vmatmul.mubr.bf16.gmra.mrb[4].mxu0 %v294_v27 }
  0x96   : > { %971 = vmatprep.mubr.bf16.mxu0 %v295_v28 }
  0x9d   : > { %972 = vmatmul.mubr.bf16.gmra.mrb[8].mxu0 %v296_v33  ;;  %v899_v33 = vld [vmem:[%s1686_s4] ss:$0 sm:$0xff] }
  0x9e   : > { %975 = vmatprep.mubr.bf16.mxu0 %v297_v34 }
  0xa5   : > { %976 = vmatmul.mubr.bf16.gmra.mrb[12].mxu0 %v298_v37 }
 0x160   : > { %v965_v41 = vpop.f32.mrb[0].mxu0 }
 0x161   : > { %v413_v42 = vadd.f32 %v965_v41, %v890_v40  ;;  %v404_v43 = vpop.f32.mrb[1].mxu0 }
 0x162   : > { %v405_v44 = vadd.f32 %v890_v40, %v404_v43  ;;  %v966_v45 = vpop.f32.mrb[2].mxu0 }
 0x163   : > { %v416_v46 = vadd.f32 %v966_v45, %v890_v40  ;;  %v407_v47 = vpop.f32.mrb[3].mxu0  ;;  %v469_v49 = vmax.f32 %v413_v42, 0.0 }
 0x164   : > { %v408_v48 = vadd.f32 %v890_v40, %v407_v47  ;;  %v467_v51 = vmax.f32 %v405_v44, 0.0 }
 0x165   : > { %v470_v50 = vmax.f32 %v416_v46, 0.0 }
 0x166   : > { %v468_v52 = vmax.f32 %v408_v48, 0.0 }
 0x167   : > { %v484_v53 = vpack.c.bf16 %v470_v50, %v469_v49 }
 0x168   : > { %v969_v54 = vpop.f32.mrb[4].mxu0  ;;  %v483_v55 = vpack.c.bf16 %v468_v52, %v467_v51 }
 0x169   : > { %v429_v56 = vadd.f32 %v969_v54, %v890_v40  ;;  %v420_v57 = vpop.f32.mrb[5].mxu0 }
 0x16a   : > { %v421_v58 = vadd.f32 %v890_v40, %v420_v57  ;;  %v970_v59 = vpop.f32.mrb[6].mxu0  ;;  %995 = vmatprep.mubr.bf16.mxu1 %v483_v55 }
 0x16b   : > { %v432_v60 = vadd.f32 %v970_v59, %v890_v40  ;;  %v423_v61 = vpop.f32.mrb[7].mxu0  ;;  %996 = vmatmul.mubr.bf16.vlgmr.msra.gmra.mrb[0].mxu1 %v484_v53  ;;  %v473_v63 = vmax.f32 %v429_v56, 0.0 }
 0x16c   : > { %v424_v62 = vadd.f32 %v890_v40, %v423_v61  ;;  %v471_v1 = vmax.f32 %v421_v58, 0.0 }
 0x16d   : > { %v474_v0 = vmax.f32 %v432_v60, 0.0 }
 0x16e   : > { %v472_v2 = vmax.f32 %v424_v62, 0.0 }
 0x16f   : > { %v486_v3 = vpack.c.bf16 %v474_v0, %v473_v63 }
 0x170   : > { %v485_v4 = vpack.c.bf16 %v472_v2, %v471_v1  ;;  %v973_v5 = vpop.f32.mrb[8].mxu0 }
 0x171   : > { %v445_v6 = vadd.f32 %v973_v5, %v890_v40  ;;  %v436_v7 = vpop.f32.mrb[9].mxu0 }
 0x172   : > { %v437_v8 = vadd.f32 %v890_v40, %v436_v7  ;;  %v974_v9 = vpop.f32.mrb[10].mxu0  ;;  %999 = vmatprep.mubr.bf16.mxu1 %v485_v4 }
 0x173   : > { %v448_v10 = vadd.f32 %v974_v9, %v890_v40  ;;  %v439_v11 = vpop.f32.mrb[11].mxu0  ;;  %1000 = vmatmul.mubr.bf16.gmra.mrb[4].mxu1 %v486_v3  ;;  %v477_v13 = vmax.f32 %v445_v6, 0.0 }
 0x174   : > { %v440_v12 = vadd.f32 %v890_v40, %v439_v11  ;;  %v475_v15 = vmax.f32 %v437_v8, 0.0 }
 0x175   : > { %v478_v14 = vmax.f32 %v448_v10, 0.0 }
 0x176   : > { %v476_v16 = vmax.f32 %v440_v12, 0.0 }
 0x177   : > { %v488_v17 = vpack.c.bf16 %v478_v14, %v477_v13 }
 0x178   : > { %v487_v18 = vpack.c.bf16 %v476_v16, %v475_v15  ;;  %v977_v19 = vpop.f32.mrb[12].mxu0 }
 0x179   : > { %v461_v20 = vadd.f32 %v977_v19, %v890_v40  ;;  %v452_v21 = vpop.f32.mrb[13].mxu0 }
 0x17a   : > { %v453_v22 = vadd.f32 %v890_v40, %v452_v21  ;;  %v978_v23 = vpop.f32.mrb[14].mxu0  ;;  %1003 = vmatprep.mubr.bf16.mxu1 %v487_v18 }
 0x17b   : > { %v464_v24 = vadd.f32 %v978_v23, %v890_v40  ;;  %v455_v25 = vpop.f32.mrb[15].mxu0  ;;  %1004 = vmatmul.mubr.bf16.gmra.mrb[8].mxu1 %v488_v17  ;;  %v481_v27 = vmax.f32 %v461_v20, 0.0 }
 0x17c   : > { %v456_v26 = vadd.f32 %v890_v40, %v455_v25  ;;  %v479_v29 = vmax.f32 %v453_v22, 0.0 }
 0x17d   : > { %v482_v28 = vmax.f32 %v464_v24, 0.0 }
 0x17e   : > { %v480_v30 = vmax.f32 %v456_v26, 0.0 }
 0x17f   : > { %v490_v31 = vpack.c.bf16 %v482_v28, %v481_v27 }
 0x180   : > { %v489_v32 = vpack.c.bf16 %v480_v30, %v479_v29 }
 0x182   : > { %1007 = vmatprep.mubr.bf16.mxu1 %v489_v32 }
 0x183   : > { %1008 = vmatmul.mubr.bf16.gmra.mrb[12].mxu1 %v490_v31 }
 0x23e   : > { %v997_v34 = vpop.f32.mrb[0].mxu1 }
 0x23f   : > { %v1532_v35 = vadd.f32 %v997_v34, %v899_v33  ;;  %v596_v36 = vpop.f32.mrb[1].mxu1 }
 0x240   : > { %v1534_v37 = vadd.f32 %v899_v33, %v596_v36  ;;  %v998_v38 = vpop.f32.mrb[2].mxu1 }
 0x241   : > { %v1536_v39 = vadd.f32 %v998_v38, %v899_v33  ;;  %v599_v40 = vpop.f32.mrb[3].mxu1  ;;  %v661_v41 = vmul.f32 %v1532_v35, %v1532_v35 }
 0x242   : > { %v1540_v42 = vadd.f32 %v899_v33, %v599_v40  ;;  %v659_v43 = vmul.f32 %v1534_v37, %v1534_v37 }
 0x243   : > { %679 = vadd.xlane.f32.xlu1 %v661_v41  ;;  %v662_v44 = vmul.f32 %v1536_v39, %v1536_v39 }
 0x244   : > { %675 = vadd.xlane.f32.xlu0 %v659_v43  ;;  %v660_v46 = vmul.f32 %v1540_v42, %v1540_v42 }
 0x246   : > { %v1001_v45 = vpop.f32.mrb[4].mxu1 }
 0x247   : > { %v1548_v47 = vadd.f32 %v1001_v45, %v899_v33  ;;  %681 = vadd.xlane.f32.xlu1 %v662_v44  ;;  %v612_v48 = vpop.f32.mrb[5].mxu1 }
 0x248   : > { %v1002_v49 = vpop.f32.mrb[6].mxu1  ;;  %677 = vadd.xlane.f32.xlu0 %v660_v46  ;;  %v1554_v53 = vadd.f32 %v899_v33, %v612_v48 }
 0x249   : > { %v1550_v50 = vadd.f32 %v1002_v49, %v899_v33  ;;  %v615_v51 = vpop.f32.mrb[7].mxu1  ;;  %v665_v52 = vmul.f32 %v1548_v47, %v1548_v47 }
 0x24a   : > { %v1556_v54 = vadd.f32 %v899_v33, %v615_v51  ;;  %v663_v57 = vmul.f32 %v1554_v53, %v1554_v53 }
 0x24b   : > { %v666_v55 = vmul.f32 %v1550_v50, %v1550_v50 }
 0x24c   : > { %687 = vadd.xlane.f32.xlu0 %v665_v52  ;;  %v664_v60 = vmul.f32 %v1556_v54, %v1556_v54 }
 0x24d   : > { %689 = vadd.xlane.f32.xlu1 %v666_v55 }
 0x24e   : > { %v1005_v56 = vpop.f32.mrb[8].mxu1 }
 0x24f   : > { %v1562_v58 = vadd.f32 %v1005_v56, %v899_v33  ;;  %v628_v59 = vpop.f32.mrb[9].mxu1 }
 0x250   : > { %v1006_v61 = vpop.f32.mrb[10].mxu1  ;;  %683 = vadd.xlane.f32.xlu0 %v663_v57  ;;  %v1570_v1 = vadd.f32 %v899_v33, %v628_v59 }
 0x251   : > { %v1566_v62 = vadd.f32 %v1006_v61, %v899_v33  ;;  %v631_v63 = vpop.f32.mrb[11].mxu1  ;;  %685 = vadd.xlane.f32.xlu1 %v664_v60  ;;  %v669_v0 = vmul.f32 %v1562_v58, %v1562_v58 }
 0x252   : > { %v1572_v2 = vadd.f32 %v899_v33, %v631_v63  ;;  %v667_v5 = vmul.f32 %v1570_v1, %v1570_v1 }
 0x253   : > { %v670_v3 = vmul.f32 %v1566_v62, %v1566_v62 }
 0x254   : > { %695 = vadd.xlane.f32.xlu0 %v669_v0  ;;  %v668_v7 = vmul.f32 %v1572_v2, %v1572_v2 }
 0x255   : > { %697 = vadd.xlane.f32.xlu1 %v670_v3 }
 0x256   : > { %v1009_v4 = vpop.f32.mrb[12].mxu1 }
 0x257   : > { %v644_v6 = vpop.f32.mrb[13].mxu1  ;;  %v1582_v11 = vadd.f32 %v1009_v4, %v899_v33 }
 0x258   : > { %v1580_v8 = vadd.f32 %v899_v33, %v644_v6  ;;  %v1010_v9 = vpop.f32.mrb[14].mxu1  ;;  %691 = vadd.xlane.f32.xlu0 %v667_v5 }
 0x259   : > { %v647_v10 = vpop.f32.mrb[15].mxu1  ;;  %693 = vadd.xlane.f32.xlu1 %v668_v7  ;;  %v1588_v14 = vadd.f32 %v1010_v9, %v899_v33  ;;  %v673_v16 = vmul.f32 %v1582_v11, %v1582_v11 }
 0x25a   : > { %v1584_v12 = vadd.f32 %v899_v33, %v647_v10  ;;  %v671_v13 = vmul.f32 %v1580_v8, %v1580_v8 }
 0x25b   : > { %v674_v17 = vmul.f32 %v1588_v14, %v1588_v14 }
 0x25c   : > { %699 = vadd.xlane.f32.xlu0 %v671_v13  ;;  %v672_v15 = vmul.f32 %v1584_v12, %v1584_v12 }
 0x25e   : > { %701 = vadd.xlane.f32.xlu1 %v672_v15 }
 0x260   : > { %703 = vadd.xlane.f32.xlu0 %v673_v16 }
 0x262   : > { %705 = vadd.xlane.f32.xlu1 %v674_v17 }
 0x2d0   : > { %v680_v18 = vpop.xlane.xlu1 %679 }
 0x2d1   : > { %v709_v19 = vmax.f32 %v680_v18, 1e-24  ;;  %v676_v20 = vpop.xlane.xlu0 %675 }
 0x2d2   : > { %v707_v21 = vmax.f32 %v676_v20, 1e-24 }
 0x2d3   : > { %1100 = vrsqrt.f32 %v709_v19 }
 0x2d4   : > { %1102 = vrsqrt.f32 %v707_v21  ;;  %v682_v22 = vpop.xlane.xlu1 %681 }
 0x2d5   : > { %v710_v23 = vmax.f32 %v682_v22, 1e-24  ;;  %v678_v24 = vpop.xlane.xlu0 %677 }
 0x2d6   : > { %v708_v25 = vmax.f32 %v678_v24, 1e-24 }
 0x2d7   : > { %1104 = vrsqrt.f32 %v710_v23 }
 0x2d8   : > { %1106 = vrsqrt.f32 %v708_v25 }
 0x2d9   : > { %v688_v26 = vpop.xlane.xlu0 %687 }
 0x2da   : > { %v713_v27 = vmax.f32 %v688_v26, 1e-24  ;;  %v690_v28 = vpop.xlane.xlu1 %689 }
 0x2db   : > { %v714_v29 = vmax.f32 %v690_v28, 1e-24 }
 0x2dc   : > { %1108 = vrsqrt.f32 %v713_v27 }
 0x2dd   : > { %v1101_v30 = vpop.eup %1100  ;;  %1110 = vrsqrt.f32 %v714_v29  ;;  %v684_v31 = vpop.xlane.xlu0 %683 }
 0x2de   : > { %v1103_v32 = vpop.eup %1102  ;;  %v741_v33 = vmul.f32 %v1101_v30, %v1532_v35  ;;  %v711_v34 = vmax.f32 %v684_v31, 1e-24  ;;  %v686_v36 = vpop.xlane.xlu1 %685 }
 0x2df   : > { %v739_v38 = vmul.f32 %v1103_v32, %v1534_v37  ;;  %v712_v40 = vmax.f32 %v686_v36, 1e-24 }
 0x2e0   : > { %757 = vst [vmem:[%s1600_s11 + $0x10] sm:$0xff] %v741_v33  ;;  %1112 = vrsqrt.f32 %v711_v34 }
 0x2e1   : > { %v1105_v41 = vpop.eup %1104  ;;  %755 = vst [vmem:[%s1600_s11] sm:$0xff] %v739_v38  ;;  %1114 = vrsqrt.f32 %v712_v40  ;;  %v696_v43 = vpop.xlane.xlu0 %695 }
 0x2e2   : > { %v1107_v44 = vpop.eup %1106  ;;  %v742_v35 = vmul.f32 %v1105_v41, %v1536_v39  ;;  %v717_v45 = vmax.f32 %v696_v43, 1e-24  ;;  %v698_v46 = vpop.xlane.xlu1 %697 }
 0x2e3   : > { %v740_v37 = vmul.f32 %v1107_v44, %v1540_v42  ;;  %v718_v48 = vmax.f32 %v698_v46, 1e-24 }
 0x2e4   : > { %758 = vst [vmem:[%s1600_s11 + $0x18] sm:$0xff] %v742_v35  ;;  %1116 = vrsqrt.f32 %v717_v45 }
 0x2e5   : > { %756 = vst [vmem:[%s1600_s11 + $0x8] sm:$0xff] %v740_v37  ;;  %1118 = vrsqrt.f32 %v718_v48  ;;  %v692_v49 = vpop.xlane.xlu0 %691 }
 0x2e6   : > { %v1109_v51 = vpop.eup %1108  ;;  %v715_v52 = vmax.f32 %v692_v49, 1e-24  ;;  %v694_v55 = vpop.xlane.xlu1 %693 }
 0x2e7   : > { %v1111_v56 = vpop.eup %1110  ;;  %v745_v57 = vmul.f32 %v1109_v51, %v1548_v47  ;;  %v716_v39 = vmax.f32 %v694_v55, 1e-24 }
 0x2e8   : > { %v746_v59 = vmul.f32 %v1111_v56, %v1550_v50  ;;  %1120 = vrsqrt.f32 %v715_v52 }
 0x2e9   : > { %761 = vst [vmem:[%s1600_s11 + $0x30] sm:$0xff] %v745_v57  ;;  %1122 = vrsqrt.f32 %v716_v39  ;;  %v700_v42 = vpop.xlane.xlu0 %699 }
 0x2ea   : > { %v1113_v60 = vpop.eup %1112  ;;  %762 = vst [vmem:[%s1600_s11 + $0x38] sm:$0xff] %v746_v59  ;;  %v719_v61 = vmax.f32 %v700_v42, 1e-24 }
 0x2eb   : > { %v1115_v63 = vpop.eup %1114  ;;  %v743_v0 = vmul.f32 %v1113_v60, %v1554_v53  ;;  %v702_v3 = vpop.xlane.xlu1 %701 }
 0x2ec   : > { %v744_v4 = vmul.f32 %v1115_v63, %v1556_v54  ;;  %1124 = vrsqrt.f32 %v719_v61  ;;  %v720_v47 = vmax.f32 %v702_v3, 1e-24 }
 0x2ed   : > { %759 = vst [vmem:[%s1600_s11 + $0x20] sm:$0xff] %v743_v0  ;;  %v704_v50 = vpop.xlane.xlu0 %703 }
 0x2ee   : > { %v1117_v5 = vpop.eup %1116  ;;  %760 = vst [vmem:[%s1600_s11 + $0x28] sm:$0xff] %v744_v4  ;;  %1126 = vrsqrt.f32 %v720_v47  ;;  %v721_v6 = vmax.f32 %v704_v50, 1e-24 }
 0x2ef   : > { %v1119_v7 = vpop.eup %1118  ;;  %v749_v9 = vmul.f32 %v1117_v5, %v1562_v58  ;;  %v706_v10 = vpop.xlane.xlu1 %705 }
 0x2f0   : > { %v750_v53 = vmul.f32 %v1119_v7, %v1566_v62  ;;  %1128 = vrsqrt.f32 %v721_v6  ;;  %v722_v54 = vmax.f32 %v706_v10, 1e-24 }
 0x2f1   : > { %765 = vst [vmem:[%s1600_s11 + $0x50] sm:$0xff] %v749_v9 }
 0x2f2   : > { %v1121_v13 = vpop.eup %1120  ;;  %766 = vst [vmem:[%s1600_s11 + $0x58] sm:$0xff] %v750_v53  ;;  %1130 = vrsqrt.f32 %v722_v54 }
 0x2f3   : > { %v1123_v15 = vpop.eup %1122  ;;  %v747_v16 = vmul.f32 %v1121_v13, %v1570_v1 }
 0x2f4   : > { %v748_v17 = vmul.f32 %v1123_v15, %v1572_v2 }
 0x2f5   : > { %763 = vst [vmem:[%s1600_s11 + $0x40] sm:$0xff] %v747_v16 }
 0x2f6   : > { %v1125_v58 = vpop.eup %1124  ;;  %764 = vst [vmem:[%s1600_s11 + $0x48] sm:$0xff] %v748_v17 }
 0x2f7   : > { %v751_v62 = vmul.f32 %v1125_v58, %v1580_v8 }
 0x2f8   : > { %v1127_v18 = vpop.eup %1126 }
 0x2f9   : > { %767 = vst [vmem:[%s1600_s11 + $0x60] sm:$0xff] %v751_v62  ;;  %v752_v19 = vmul.f32 %v1127_v18, %v1584_v12 }
 0x2fa   : > { %v1129_v20 = vpop.eup %1128 }
 0x2fb   : > { %768 = vst [vmem:[%s1600_s11 + $0x68] sm:$0xff] %v752_v19  ;;  %v753_v1 = vmul.f32 %v1129_v20, %v1582_v11 }
 0x2fc   : > { %v1131_v2 = vpop.eup %1130 }
 0x2fd   : > { %769 = vst [vmem:[%s1600_s11 + $0x70] sm:$0xff] %v753_v1  ;;  %v754_v8 = vmul.f32 %v1131_v2, %v1588_v14 }
 0x2ff   : > { %770 = vst [vmem:[%s1600_s11 + $0x78] sm:$0xff] %v754_v8 }
 0x300   : > { %1231 = shalt.err (!%p1228_p7)
}
 0x301   : > { %s1232_s6 = scalar_lea.hbm %s1634_s9, 2048  ;;  %s1236_s8 = scalar_lea.hbm %s1687_s5, 6144 }
 0x302   : > { %p1233_p9 = scmp.ne.s32.totalorder %s1634_s9, %s1232_s6  ;;  %p1237_p5 = scmp.lt.u32.totalorder %s1634_s9, %s1687_s5 }
 0x303   : > { %p1238_p10 = scmp.lt.u32.totalorder %s1236_s8, %s1232_s6  ;;  %p1240_p1 = scmp.lt.u32.totalorder %s1232_s6, %s1634_s9 }
 0x304   : > { %p1234_p12 = pnand %p1233_p9, %p1442_p4 }
 0x305   : > { %p1239_p11 = por %p1238_p10, %p1237_p5 }
 0x306   : > { %p1235_p0 = pneg %p1234_p12 }
 0x307   : > { %p1241_p2 = por %p1240_p1, %p1239_p11 }
 0x309   : > { %p1242_p6 = pnand %p1241_p2, %p1235_p0 }
 0x30b   : > { %1245 = shalt.err (!%p1242_p6)
}
 0x30c   : > { %s1298_s28 = smov 128   ;;  %s1299_s15 = smov 8  }
 0x30d   : > { %1021 = dma.vmem_to_hbm [thread:$0]  (%p1442_p4), %s1636_s30, 2048, %s1634_s9, %s772_s22, %s1298_s28, %s1298_s28, %s1299_s15  }
 0x30e PF: > { %p1043_p8 = scmp.ge.s32.totalorder %s1288_s21, 2  ;;  %s800_s16 = sand.u32 1, %s1276_s18  }
 0x30f   : > { %p1702_p13 = scmp.ne.s32.totalorder %s1692_s25, 0  ;;  %s801_s12 = scalar_lea.sflag [#allocation4], %s800_s16 }
 0x311   : > { %p1035_p3 = pnand %p1043_p8, %p1702_p13 }
 0x313   : > { %1271 = dma.done.wait (!%p1035_p3), %s801_s12, 2048  }
 0x314   : > { %1273 = vsyncadd (!%p1035_p3), %s801_s12, 4294965248  ;;  %p19_p7 = scmp.ge.s32.totalorder %s1432_s14, 5   ;;  %s1703_s18 = smov %s1280_s19 }
 0x315   : > { %s1704_s19 = smov %s1284_s20  ;;  %s1705_s20 = smov %s1448_s27 }
 0x316   : > { %s1706_s21 = smov %s1432_s14  ;;  %21 = sbr.rel (!%p19_p7) target bundleno = 6 (0x6), region = 93 }
 0x31d   :  { %806 = vsyncpa [#allocation3], 1 }
 0x31e   :  { %808 = vsyncpa [#allocation3 + $0x1], 1 }
 0x31f   :  { %809 = vsyncpa [#allocation6], 1 }
 0x320   :  { %810 = vsyncpa [#allocation4], 1 }
 0x321   :  { %812 = vsyncpa [#allocation4 + $0x1], 1 }

</bundles_post_ra>
